<compile_context>
chip_gen: v7x
topology: tpu7x:2x2x1
jax: 0.10.0
libtpu: 0.0.40
codegen_flags: <defaults>
</compile_context>

<pallas_src>
import jax
import jax.numpy as jnp
from jax.experimental import pallas as pl
from jax.experimental.pallas import tpu as pltpu


def _choose_seq_tile(S, D, itemsize, budget_bytes, cap):
    """Largest TS (multiple of 8, divides S, <= cap) with ~6 live (TS, D) buffers in budget."""
    ts_budget = max(8, budget_bytes // (6 * D * itemsize))
    limit = min(S, cap, ts_budget)
    best = None
    ts = 8
    while ts <= limit:
        if S % ts == 0:
            best = ts
        ts += 8
    if best is None:
        return S  # tiny or ragged sequence: one full-sequence tile (legal, perf-only)
    return best


# ---------------------------------------------------------------------------
# Fast path: token table resident in VMEM, gather via dynamic VMEM indexing.
# ---------------------------------------------------------------------------
def _tok_pos_kernel_vmem(ids_ref, tok_ref, pos_ref, out_ref, gbuf):
    # ids_ref : SMEM (B, S) int32          (scalar prefetch)
    # tok_ref : VMEM (V, D)                (resident: constant index_map)
    # pos_ref : VMEM (TS, D)               (rows [st*TS, st*TS+TS))
    # out_ref : VMEM (TS, D)               (batch dim squeezed)
    # gbuf    : VMEM (TS, D) scratch
    st = pl.program_id(0)
    b = pl.program_id(1)
    TS, _ = out_ref.shape
    V = tok_ref.shape[0]
    base = st * TS

    @pl.loop(0, TS)
    def _(i):
        idx = jnp.clip(ids_ref[b, base + i], 0, V - 1)
        gbuf[pl.ds(i, 1), :] = tok_ref[pl.ds(idx, 1), :]

    # One dense full-tile add + store.
    out_ref[...] = gbuf[...] + pos_ref[...]


# ---------------------------------------------------------------------------
# HBM path: manual DMA row gather, shared semaphore per slot, double-buffered
# across the inner (batch) grid axis.
# ---------------------------------------------------------------------------
def _tok_pos_kernel_hbm(ids_ref, tok_hbm, pos_ref, out_ref, gbuf, sems):
    # ids_ref : SMEM (B, S) int32          (scalar prefetch)
    # tok_hbm : HBM  (V, D)                (memory_space=pl.ANY -> manual DMA gather)
    # pos_ref : VMEM (TS, D)               (resident across the inner batch sweep)
    # out_ref : VMEM (TS, D)               (batch dim squeezed)
    # gbuf    : VMEM (2, TS, D) scratch    (double-buffered gather destination)
    # sems    : DMA semaphores, shape (2,) (one shared counted sem per slot)
    st = pl.program_id(0)
    b = pl.program_id(1)
    B = pl.num_programs(1)
    TS, _ = out_ref.shape
    V = tok_hbm.shape[0]
    base = st * TS

    def issue(bb, slot):
        # Gather TS token rows for batch `bb` of this sequence tile into gbuf[slot].
        @pl.loop(0, TS)
        def _(i):
            idx = jnp.clip(ids_ref[bb, base + i], 0, V - 1)
            pltpu.make_async_copy(
                tok_hbm.at[pl.ds(idx, 1), :],
                gbuf.at[slot, pl.ds(i, 1), :],
                sems.at[slot],
            ).start()

    def wait(slot):
        # Drain the TS row-copy completions signaled on this slot's shared semaphore.
        @pl.loop(0, TS)
        def _(i):
            pltpu.make_async_copy(
                tok_hbm.at[pl.ds(0, 1), :],
                gbuf.at[slot, pl.ds(i, 1), :],
                sems.at[slot],
            ).wait()

    slot = b % 2

    # Prime the current buffer at the start of every inner (batch) sweep.
    @pl.when(b == 0)
    def _():
        issue(b, slot)

    # Prefetch the NEXT batch's rows for this sequence tile before waiting (ids are read
    # from SMEM before any semaphore wait; overlaps DMA with the add/store below).
    @pl.when(b + 1 < B)
    def _():
        issue(b + 1, (b + 1) % 2)

    wait(slot)

    # One dense full-tile add + store.
    out_ref[...] = gbuf[slot] + pos_ref[...]


def token_and_position_embedding(
    ids,
    tok_table,
    pos_table,
    *,
    vmem_table_bytes_max=4 * 1024 * 1024,   # table fast-path threshold (x2 for buffering)
    tile_budget_bytes=12 * 1024 * 1024,     # ~6 live (TS, D) buffers; safe on v5e/v6e/v7x
    max_seq_tile=1024,
):
    """ids: (B, S) int; tok_table: (V, D); pos_table: (maxlen, D). Returns (B, S, D)."""
    B, S = ids.shape
    V, D = tok_table.shape
    assert S <= pos_table.shape[0], "sequence length exceeds maxlen of the position table"

    ids = ids.astype(jnp.int32)
    pos_used = pos_table[:S]  # positions = arange(S)
    itemsize = jnp.dtype(tok_table.dtype).itemsize

    TS = _choose_seq_tile(S, D, itemsize, tile_budget_bytes, max_seq_tile)
    NT = S // TS

    use_vmem_table = (V * D * itemsize) <= vmem_table_bytes_max

    # Grid (NT, B): position tile depends only on the outer axis -> stays resident across
    # the inner batch sweep.  Inner axis is "arbitrary" on the HBM path because the gather
    # is double-buffered across consecutive inner steps.
    pos_spec = pl.BlockSpec((TS, D), lambda st, b, ids_ref: (st, 0))
    out_spec = pl.BlockSpec((pl.Squeezed(), TS, D), lambda st, b, ids_ref: (b, st, 0))

    if use_vmem_table:
        tok_spec = pl.BlockSpec((V, D), lambda st, b, ids_ref: (0, 0))  # resident
        kernel = _tok_pos_kernel_vmem
        scratch = [pltpu.VMEM((TS, D), tok_table.dtype)]
        dim_sem = ("parallel", "parallel")
    else:
        tok_spec = pl.BlockSpec(memory_space=pl.ANY)  # stays in HBM, manual DMA gather
        kernel = _tok_pos_kernel_hbm
        scratch = [
            pltpu.VMEM((2, TS, D), tok_table.dtype),
            pltpu.SemaphoreType.DMA((2,)),
        ]
        dim_sem = ("parallel", "arbitrary")

    grid_spec = pltpu.PrefetchScalarGridSpec(
        num_scalar_prefetch=1,  # ids -> SMEM; passed first to the kernel and to index_maps
        grid=(NT, B),
        in_specs=[tok_spec, pos_spec],
        out_specs=out_spec,
        scratch_shapes=scratch,
    )

    return pl.pallas_call(
        kernel,
        out_shape=jax.ShapeDtypeStruct((B, S, D), tok_table.dtype),
        grid_spec=grid_spec,
        compiler_params=pltpu.CompilerParams(
            dimension_semantics=dim_sem,
            vmem_limit_bytes=32 * 1024 * 1024,
        ),
    )(ids, tok_table, pos_used)


if __name__ == "__main__":
    # Small shapes consistent with the module.
    batch, seq = 2, 8
    maxlen, vocab_size, embed_dim = 16, 50, 32

    key = jax.random.PRNGKey(0)
    k_tok, k_pos, k_ids = jax.random.split(key, 3)

    tok_table = jax.random.normal(k_tok, (vocab_size, embed_dim), dtype=jnp.float32)
    pos_table = jax.random.normal(k_pos, (maxlen, embed_dim), dtype=jnp.float32)
    ids = jax.random.randint(k_ids, (batch, seq), 0, vocab_size, dtype=jnp.int32)

    # Pure-JAX reference: token_emb(x) + position_emb(arange(S))
    ref = jnp.take(tok_table, ids, axis=0) + pos_table[:seq][None, :, :]

    # Path 1: VMEM-resident table fast path (auto-selected for this small vocab).
    out_fast = jax.block_until_ready(token_and_position_embedding(ids, tok_table, pos_table))
    assert out_fast.shape == (batch, seq, embed_dim)
    assert jnp.allclose(out_fast, ref, atol=1e-6), "fast-path mismatch vs reference"

    # Path 2: force the HBM DMA-gather (production-vocab) path and verify it too.
    out_hbm = jax.block_until_ready(
        token_and_position_embedding(ids, tok_table, pos_table, vmem_table_bytes_max=0)
    )
    assert jnp.allclose(out_hbm, ref, atol=1e-6), "HBM-path mismatch vs reference"

    print("KERNEL_OK")
</pallas_src>

<mosaic_0001>
module attributes {stable_mosaic.version = 11 : i64} {
  func.func @_tok_pos_kernel_vmem(%arg0: i32, %arg1: i32, %arg2: memref<2x8xi32, #tpu.memory_space<smem>>, %arg3: memref<50x32xf32, #tpu.memory_space<vmem>>, %arg4: memref<8x32xf32, #tpu.memory_space<vmem>>, %arg5: memref<1x8x32xf32, #tpu.memory_space<vmem>>, %arg6: memref<8x32xf32, #tpu.memory_space<vmem>>) attributes {dimension_semantics = [#tpu.dimension_semantics<parallel>, #tpu.dimension_semantics<parallel>], iteration_bounds = array<i64: 1, 2>, scalar_prefetch = 1 : i64, scratch_operands = 1 : i64, tpu.core_type = #tpu.core_type<tc>, window_params = [{pipeline_mode = #tpu.pipeline_mode<synchronous>, transform_indices = @transform_0, window_bounds = array<i64: 50, 32>}, {transform_indices = @transform_1, window_bounds = array<i64: 8, 32>}, {transform_indices = @transform_2, window_bounds = array<i64: 1, 8, 32>}]} {
    %c8_i32 = arith.constant 8 : i32
    %0 = arith.muli %arg0, %c8_i32 : i32
    %c0_i32 = arith.constant 0 : i32
    %c8_i32_0 = arith.constant 8 : i32
    %1 = arith.addi %c0_i32, %c8_i32_0 : i32
    %c1_i32 = arith.constant 1 : i32
    scf.for %arg7 = %c0_i32 to %1 step %c1_i32  : i32 {
      %c1_i32_8 = arith.constant 1 : i32
      %8 = arith.muli %arg7, %c1_i32_8 : i32
      %c0_i32_9 = arith.constant 0 : i32
      %9 = arith.addi %c0_i32_9, %8 : i32
      %10 = arith.addi %0, %9 : i32
      %11 = arith.index_cast %arg1 : i32 to index
      %12 = arith.index_cast %10 : i32 to index
      %13 = memref.load %arg2[%11, %12] : memref<2x8xi32, #tpu.memory_space<smem>>
      %c0_i32_10 = arith.constant 0 : i32
      %c49_i32 = arith.constant 49 : i32
      %14 = arith.maxsi %c0_i32_10, %13 : i32
      %15 = arith.minsi %c49_i32, %14 : i32
      %16 = arith.index_cast %15 : i32 to index
      %c0_11 = arith.constant 0 : index
      %17 = vector.load %arg3[%16, %c0_11] : memref<50x32xf32, #tpu.memory_space<vmem>>, vector<1x32xf32>
      %18 = arith.index_cast %9 : i32 to index
      %c0_12 = arith.constant 0 : index
      %19 = vector.load %arg6[%18, %c0_12] : memref<8x32xf32, #tpu.memory_space<vmem>>, vector<1x32xf32>
      tpu.vector_store %arg6[%18, %c0_12], %17 {strides = array<i32>} : memref<8x32xf32, #tpu.memory_space<vmem>>, vector<1x32xf32>,
    }
    %c8_i32_1 = arith.constant 8 : i32
    %c0 = arith.constant 0 : index
    %c0_2 = arith.constant 0 : index
    %2 = vector.load %arg6[%c0, %c0_2] : memref<8x32xf32, #tpu.memory_space<vmem>>, vector<8x32xf32>
    %c0_3 = arith.constant 0 : index
    %c0_4 = arith.constant 0 : index
    %3 = vector.load %arg4[%c0_3, %c0_4] : memref<8x32xf32, #tpu.memory_space<vmem>>, vector<8x32xf32>
    %4 = arith.addf %2, %3 : vector<8x32xf32>
    %c0_5 = arith.constant 0 : index
    %c0_6 = arith.constant 0 : index
    %c0_7 = arith.constant 0 : index
    %5 = vector.load %arg5[%c0_5, %c0_6, %c0_7] : memref<1x8x32xf32, #tpu.memory_space<vmem>>, vector<1x8x32xf32>
    %6 = vector.shape_cast %5 : vector<1x8x32xf32> to vector<8x32xf32>
    %7 = vector.shape_cast %4 : vector<8x32xf32> to vector<1x8x32xf32>
    tpu.vector_store %arg5[%c0_5, %c0_6, %c0_7], %7 {strides = array<i32>} : memref<1x8x32xf32, #tpu.memory_space<vmem>>, vector<1x8x32xf32>,
    return
  }
  func.func @transform_0(%arg0: i32, %arg1: i32, %arg2: memref<2x8xi32, #tpu.memory_space<smem>>) -> (i32, i32) {
    %c0_i32 = arith.constant 0 : i32
    %c0_i32_0 = arith.constant 0 : i32
    %c0_i32_1 = arith.constant 0 : i32
    return %c0_i32, %c0_i32_0 : i32, i32
  }
  func.func @transform_1(%arg0: i32, %arg1: i32, %arg2: memref<2x8xi32, #tpu.memory_space<smem>>) -> (i32, i32) {
    %c0_i32 = arith.constant 0 : i32
    %c0_i32_0 = arith.constant 0 : i32
    return %arg0, %c0_i32 : i32, i32
  }
  func.func @transform_2(%arg0: i32, %arg1: i32, %arg2: memref<2x8xi32, #tpu.memory_space<smem>>) -> (i32, i32, i32) {
    %c0_i32 = arith.constant 0 : i32
    %c0_i32_0 = arith.constant 0 : i32
    return %arg1, %arg0, %c0_i32 : i32, i32, i32
  }
}

</mosaic_0001>

<bundles_post_ra>
// kernel: tpu_custom_call.1
= control target key start
LH: loop header
LB: loop body
LE: loop exit
PB: predicated region body
PF: predicated region fallthrough
CT: control target
= control target key end

     0   :  { %s617_s0 = inlined_call_operand.vmem [shape: s32[2,8], index: 0, kind: input, shape index: {}]   ;;  %s618_s1 = inlined_call_operand.vmem [shape: f32[50,32], index: 1, kind: input, shape index: {}]   ;;  %s619_s2 = inlined_call_operand.vmem [shape: f32[8,32], index: 2, kind: input, shape index: {}]   ;;  %s620_s3 = inlined_call_operand.hbm [shape: f32[2,8,32], index: 3, kind: output, shape index: {}]  }
   0x1   :  { %s8_s14 = sshll.u32 %s617_s0, 4  ;;  %s9_s14 = int_to_ptr.vmem [resolvable:$true] %s8_s14 }
   0x2   :  { %s365_s15 = scalar_lea.vmem %s9_s14, 32  ;;  %p370_p1 = scmp.lt.s32.totalorder %s9_s14, %s9_s14 }
   0x3   :  { %p366_p0 = scmp.ne.s32.totalorder %s9_s14, %s365_s15  ;;  %p371_p2 = scmp.lt.s32.totalorder %s365_s15, %s365_s15 }
   0x5   :  { %p372_p3 = por %p371_p2, %p370_p1 }
   0x7   :  { %p373_p4 = pnand %p372_p3, %p366_p0 }
   0x9   :  { %376 = shalt.err (!%p373_p4)  }
   0xa   :  { %s467_s16 = smov [#allocation4]  }
   0xb   :  { %11 = dma.vmem_to_smem %s9_s14, 32, %s467_s16, [#allocation3] }
   0xc   :  { %433 = dma.done.wait [#allocation3], 32 }
   0xd   :  { %434 = vsyncadd [#allocation3], 4294967264 }
   0xe   :  { %13 = sfence }
   0xf   :  { %14 = vsyncpa [#allocation6], 0 }
  0x10   :  { %16 = vsyncpa [#allocation6 + $0x1], 0  ;;  %s492_s17 = smov 0   ;;  %s494_s18 = smov 0  }
  0x11   :  { %s496_s0 = smov 0   ;;  %s498_s19 = smov 0  }
  0x12   :  { %s500_s20 = smov 0   ;;  %s502_s21 = smov 0  }
  0x13 LB: > { %s283_s22 = sadd.s32 4294967295, %s461_s21   ;;  %s284_s23 = sadd.s32 4294967294, %s461_s21   ;;  %s461_s21 = sphi %s502_s21, %s22_s21   ;;  %s457_s20 = sphi %s500_s20, %s627_s20   ;;  %s453_s19 = sphi %s498_s19, %s626_s19   ;;  %s449_s0 = sphi %s496_s0, %s625_s0   ;;  %s445_s18 = sphi %s494_s18, %s624_s18   ;;  %s441_s17 = sphi %s492_s17, %s623_s17  }
  0x14   : > { %s31_s24 = sadd.s32 1, %s457_s20  ;;  %s90_s25 = sadd.s32 1, %s449_s0 }
  0x15   : > { %p32_p5 = scmp.ge.s32.totalorder %s31_s24, 2  ;;  %p100_p6 = scmp.ne.s32.totalorder %s449_s0, %s445_s18 }
  0x16   : > { %p101_p7 = scmp.eq.s32.totalorder %s283_s22, 1  ;;  %p106_p8 = scmp.ne.s32.totalorder %s445_s18, %s441_s17 }
  0x17   : > { %s629_s24 = smov (%p32_p5, %s31_s24), 0  ;;  %p107_p10 = scmp.eq.s32.totalorder %s284_s23, 1 }
  0x18   : > { %p532_p9 = por %p101_p7, %p100_p6  ;;  %s85_s27 = ssub.s32 %s457_s20, %s629_s24 }
  0x19   : > { %p287_p11 = scmp.ge.s32.totalorder %s461_s21, 1  ;;  %p88_p12 = scmp.eq.s32.totalorder %s85_s27, 0 }
  0x1a   : > { %p539_p13 = por %p107_p10, %p106_p8  ;;  %p135_p0 = scmp.lt.s32.totalorder %s461_s21, 3 }
  0x1b   : > { %s545_s29 = scalar_select %p88_p12, %s449_s0, %s90_s25  }
  0x1c   : > { %p136_p1 = pnand %p287_p11, %p135_p0 }
  0x1d   : > { %s153_s30 = sand.u32 (!%p136_p1), 1, %s445_s18   ;;  %s463_s6 = smov (!%p136_p1), 0  }
  0x1e   : > { %139 = sbr.rel (%p136_p1) target bundleno = 77 (0x4d), region = 28  ;;  %s550_s4 = sshll.u32 (!%p136_p1), %s153_s30, 3 }
  0x1f   : > { %s155_s5 = scalar_lea.vmem (!%p136_p1), [#allocation5], %s550_s4 }
  0x25 LB: >> { %s168_s7 = sshra.s32 %s465_s6, 7  ;;  %s173_s8 = sand.u32 127, %s465_s6  ;;  %vm183_vm0 = vcmask 253952   ;;  %s465_s6 = sphi %s463_s6, %s166_s6  }
  0x26   : >> { %s170_s9 = sadd.s32 %s453_s19, %s168_s7  ;;  %s182_s16 = scalar_lea.vmem [#allocation2], %s465_s6 }
  0x27   : >> { %s289_s10 = sshll.u32 %s170_s9, 7  ;;  %s166_s6 = sadd.s32 1, %s465_s6  }
  0x28   : >> { %s174_s11 = sadd.s32 %s289_s10, %s173_s8  ;;  %p163_p4 = scmp.ge.s32.totalorder %s166_s6, 8  }
  0x29   : >> { %s175_s12 = sld [smem:[#allocation4 + %s174_s11]]  ;;  %v186_v2 = vld [vmem:[%s619_s2] sm:$0xff] (%p163_p4)  ;;  %vm188_vm1 = vcmask (%p163_p4), 261120   ;;  %s296_s25 = sshll.u32 (%p163_p4), %s453_s19, 7 }
  0x2a   : > { %s564_s8 = scalar_lea.hbm (%p163_p4), %s620_s3, %s296_s25  ;;  %s205_s6 = sshll.u32 (%p163_p4), %s155_s5, 4  ;;  %s568_s6 = int_to_ptr.vmem [resolvable:$true] %s205_s6 }
  0x2b   : > { %s191_s9 = scalar_lea.sflag (%p163_p4), [#allocation6], %s153_s30  ;;  %s377_s10 = scalar_lea.vmem (%p163_p4), %s568_s6, 128 }
  0x2c   : > { %p378_p5 = scmp.ne.s32.totalorder (%p163_p4), %s568_s6, %s377_s10  ;;  %s468_s19 = smov (%p163_p4), [#allocation5]  }
  0x2d   : > { %s381_s11 = sshll.u32 (%p163_p4), %s468_s19, 4  ;;  %s382_s11 = int_to_ptr.vmem [resolvable:$false] %s381_s11 }
  0x2e   : > { %p379_p6 = pnand (%p163_p4), %p378_p5, %p532_p9  ;;  %p384_p8 = scmp.lt.s32.totalorder (%p163_p4), %s568_s6, %s382_s11 }
  0x2f   : >> { %p176_p2 = scmp.gt.s32.totalorder %s175_s12, 0  ;;  %p290_p3 = scmp.lt.s32.totalorder %s175_s12, 49 }
  0x30   : > { %165 = sbr.rel (!%p163_p4) target bundleno = 37 (0x25), region = 72  ;;  %p380_p7 = pneg (%p163_p4), %p379_p6 }
  0x31   : >> { %s631_s12 = smov (!%p176_p2, %s175_s12), 0 }
  0x32   : >> { %s633_s12 = smov (!%p290_p3, %s631_s12), 49 }
  0x33   : >> { %s180_s15 = scalar_lea.vmem %s618_s1, %s633_s12  ;;  %s383_s12 = scalar_lea.vmem (%p163_p4), %s382_s11, 256 }
  0x34   : >> { %v181_v0 = vld [vmem:[%s180_s15] sm:$0x1]  ;;  %p385_p10 = scmp.lt.s32.totalorder (%p163_p4), %s383_s12, %s377_s10 }
  0x35   : >> { %184 = vst.msk [vmem:[%s182_s16] sm:$0x1] %vm183_vm0, %v181_v0 }
  0x36   : > { %p386_p11 = por (%p163_p4), %p385_p10, %p384_p8 }
  0x38   : > { %p387_p12 = pnand %p386_p11, %p380_p7 }
  0x3c   : > { %v185_v1 = vld [vmem:[#allocation2] sm:$0xff] }
  0x3d   : > { %v187_v3 = vadd.f32 %v186_v2, %v185_v1 }
  0x3f   : > { %189 = vst.msk [vmem:[%s155_s5] sm:$0xff] %vm188_vm1, %v187_v3 }
  0x40   : > { %390 = shalt.err (!%p387_p12)
}
  0x41   : > { %s391_s30 = scalar_lea.hbm %s564_s8, 128  ;;  %s395_s13 = scalar_lea.hbm %s620_s3, 256 }
  0x42   : > { %p392_p0 = scmp.ne.s32.totalorder %s564_s8, %s391_s30  ;;  %p396_p3 = scmp.lt.u32.totalorder %s564_s8, %s620_s3 }
  0x43   : > { %p397_p4 = scmp.lt.u32.totalorder %s395_s13, %s391_s30  ;;  %p399_p6 = scmp.lt.u32.totalorder %s391_s30, %s564_s8 }
  0x44   : > { %p393_p1 = pnand %p392_p0, %p532_p9 }
  0x45   : > { %p398_p5 = por %p397_p4, %p396_p3 }
  0x46   : > { %p394_p2 = pneg %p393_p1 }
  0x47   : > { %p400_p7 = por %p399_p6, %p398_p5 }
  0x49   : > { %p401_p8 = pnand %p400_p7, %p394_p2 }
  0x4b   : > { %404 = shalt.err (!%p401_p8)
}
  0x4c   : > { %301 = dma.vmem_to_hbm [thread:$0]  (%p532_p9), %s568_s6, 128, %s564_s8, %s191_s9  }
  0x4d PF: > { %p307_p10 = scmp.ge.s32.totalorder %s461_s21, 2  ;;  %s217_s16 = sand.u32 1, %s441_s17  }
  0x4e   : > { %s218_s22 = scalar_lea.sflag [#allocation6], %s217_s16 }
  0x4f   : > { %p304_p11 = pnand %p307_p10, %p539_p13 }
  0x51   : > { %436 = dma.done.wait (!%p304_p11), %s218_s22, 128  }
  0x52   : > { %438 = vsyncadd (!%p304_p11), %s218_s22, 4294967168  ;;  %s22_s21 = sadd.s32 1, %s461_s21   ;;  %s623_s17 = smov %s445_s18 }
  0x53   : > { %p19_p12 = scmp.ge.s32.totalorder %s22_s21, 4   ;;  %s624_s18 = smov %s449_s0 }
  0x54   : > { %s625_s0 = smov %s545_s29  ;;  %s626_s19 = smov %s457_s20 }
  0x55   : > { %s627_s20 = smov %s629_s24  ;;  %21 = sbr.rel (!%p19_p12) target bundleno = 19 (0x13), region = 83 }
  0x5c   :  { %223 = vsyncpa [#allocation6], 1 }
  0x5d   :  { %225 = vsyncpa [#allocation6 + $0x1], 1 }

</bundles_post_ra>
